<compile_context>
chip_gen: v7x
topology: tpu7x:2x2x1
jax: 0.10.0
libtpu: 0.0.40
codegen_flags: <defaults>
</compile_context>

<pallas_src>
import functools
from typing import NamedTuple

import jax
import jax.numpy as jnp
from jax.experimental import pallas as pl
from jax.experimental.pallas import tpu as pltpu


def _round_up(x, m):
    return ((x + m - 1) // m) * m


def _is_v7x():
    try:
        kind = jax.devices()[0].device_kind.lower()
    except Exception:  # pragma: no cover - CPU/interpret fallback
        return False
    return "v7" in kind


def _vmem_budget_bytes():
    # v7x: 64 MiB physical VMEM per TC -> leave headroom for Mosaic internal scratch
    # and the in-kernel f32 temporaries.  v5e/v6e: 128 MiB physical.
    return (52 if _is_v7x() else 100) * 1024 * 1024


def _default_tm():
    # Large row tile amortizes weight re-streaming (weights are re-read per row tile).
    return 512 if _is_v7x() else 1024


# --------------------------------------------------------------------------- kernel
def _ffn_kernel(x_ref, w13_ref, w2_ref, o_ref, acc_ref, *, th, mxu_dtype):
    """One (row-tile, hidden-chunk) step of the fused SwiGLU FFN.

    x_ref  : (TM, DIMP)      VMEM  -- input row tile
    w13_ref: (DIMP, 2*TH)    VMEM  -- [W1_chunk | W3_chunk] for this hidden chunk
    w2_ref : (TH, DIMP)      VMEM  -- W2 rows for this hidden chunk
    o_ref  : (TM, DIMP)      VMEM  -- output row tile (written on last chunk)
    acc_ref: (TM, DIMP) f32  VMEM scratch accumulator (resident across hidden chunks)
    """
    h = pl.program_id(1)

    x = x_ref[...]
    # Single fused matmul for both branches: [TM, 2*TH] (f32 accumulation on MXU).
    h13 = jnp.dot(x, w13_ref[...], preferred_element_type=jnp.float32)
    h1 = h13[:, :th]                     # gate branch (f32)
    h3 = h13[:, th:]                     # linear branch (f32)
    gated = (h1 * jax.nn.sigmoid(h1)) * h3            # SwiGLU in f32
    # Partial down-projection for this hidden chunk.
    partial = jnp.dot(gated.astype(mxu_dtype), w2_ref[...],
                      preferred_element_type=jnp.float32)

    @pl.when(h == 0)
    def _():
        acc_ref[...] = partial           # first chunk: direct store, no zero-init+add

    @pl.when(h > 0)
    def _():
        acc_ref[...] += partial

    @pl.when(h == pl.num_programs(1) - 1)
    def _():
        o_ref[...] = acc_ref[...].astype(o_ref.dtype)


# --------------------------------------------------------------- one-time weight pack
class PackedFFNWeights(NamedTuple):
    w13: jax.Array   # [dim_p, 2*H_p]; cols [h*2*th, (h+1)*2*th) = [W1 chunk h | W3 chunk h]
    w2: jax.Array    # [H_p, dim_p]
    th: int          # hidden chunk size baked into the packing
    dim: int         # true (unpadded) model dim
    hidden: int      # true (unpadded) hidden dim


def pack_ffn_weights(w1, w3, w2, *, th=512, dtype=None):
    """Pad and chunk-fuse the FFN weights ONCE (hoisted out of the per-call path).

    w1/w3 : [dim, hidden] (pre-transposed vs nn.Linear), w2 : [hidden, dim].
    Padding is exact: padded hidden columns give silu(0)*0 = 0 and zero W2 rows.
    """
    dim, hidden = w1.shape
    if dtype is not None:
        w1, w3, w2 = (w.astype(dtype) for w in (w1, w3, w2))
    dim_p = _round_up(dim, 128)                                   # lane-dense last dim
    th_eff = min(_round_up(th, 128), _round_up(hidden, 128))      # hidden chunk (mult of 128)
    H_p = _round_up(hidden, th_eff)
    n_h = H_p // th_eff
    w1_p = jnp.pad(w1, ((0, dim_p - dim), (0, H_p - hidden)))
    w3_p = jnp.pad(w3, ((0, dim_p - dim), (0, H_p - hidden)))
    w2_p = jnp.pad(w2, ((0, H_p - hidden), (0, dim_p - dim)))
    w13 = jnp.concatenate(
        [w1_p.reshape(dim_p, n_h, th_eff), w3_p.reshape(dim_p, n_h, th_eff)],
        axis=2,
    ).reshape(dim_p, 2 * H_p)
    return PackedFFNWeights(w13=jax.device_put(w13), w2=jax.device_put(w2_p),
                            th=th_eff, dim=dim, hidden=hidden)


# ----------------------------------------------------------------------- per-call path
@functools.partial(jax.jit, static_argnames=("th", "tm", "use_bf16_mxu"))
def _feed_forward_packed(x, w13, w2, *, th, tm, use_bf16_mxu):
    B, S, dim = x.shape
    dim_p, two_hp = w13.shape
    H_p = two_hp // 2
    assert w2.shape == (H_p, dim_p), (w2.shape, (H_p, dim_p))
    assert H_p % th == 0
    M = B * S
    n_h = H_p // th

    x_itemsize = jnp.dtype(x.dtype).itemsize
    w_itemsize = jnp.dtype(w13.dtype).itemsize
    # Sublane packing: bf16 packs 2 rows/sublane, 8-bit packs 4.
    row_align = {1: 32, 2: 16, 4: 8}.get(x_itemsize, 8)

    # ---- row-tile plan ----
    tm_eff = _round_up(min(tm, _round_up(M, row_align)), row_align)
    if M >= 2 * row_align:
        # Megacore / v7x dual-TC: keep at least 2 row tiles so both cores get work.
        tm_eff = min(tm_eff, _round_up(pl.cdiv(M, 2), row_align))
    budget = _vmem_budget_bytes()

    def _vmem_need(t):
        return (2 * t * dim_p * x_itemsize            # x tile (double-buffered)
                + 2 * t * dim_p * x_itemsize          # out tile (double-buffered)
                + 2 * dim_p * 2 * th * w_itemsize     # w13 chunk (double-buffered)
                + 2 * th * dim_p * w_itemsize         # w2 chunk (double-buffered)
                + t * dim_p * 4                       # f32 accumulator scratch
                + 3 * t * th * 4)                     # h13 + gated f32 temporaries

    while tm_eff > row_align and _vmem_need(tm_eff) > budget:
        tm_eff = _round_up(tm_eff // 2, row_align)

    M_p = _round_up(M, tm_eff)
    n_row = M_p // tm_eff

    # ---- pad x only (cheap; weights were packed once up front) ----
    x2d = x.reshape(M, dim)
    if M_p != M or dim_p != dim:
        x2d = jnp.pad(x2d, ((0, M_p - M), (0, dim_p - dim)))

    mxu_dtype = jnp.bfloat16 if use_bf16_mxu else x.dtype

    # Honest HBM picture: x + out once, weights streamed once per row tile.
    cost = pl.CostEstimate(
        flops=6 * M_p * dim_p * H_p,
        transcendentals=M_p * H_p,
        bytes_accessed=int(2 * M_p * dim_p * x_itemsize
                           + n_row * (w13.size + w2.size) * w_itemsize),
    )

    out2d = pl.pallas_call(
        functools.partial(_ffn_kernel, th=th, mxu_dtype=mxu_dtype),
        out_shape=jax.ShapeDtypeStruct((M_p, dim_p), x.dtype),
        grid_spec=pltpu.PrefetchScalarGridSpec(
            num_scalar_prefetch=0,
            grid=(n_row, n_h),
            in_specs=[
                pl.BlockSpec((tm_eff, dim_p), lambda i, h: (i, 0)),       # x rows
                pl.BlockSpec((dim_p, 2 * th), lambda i, h: (0, h)),       # [W1|W3] chunk
                pl.BlockSpec((th, dim_p), lambda i, h: (h, 0)),           # W2 chunk
            ],
            out_specs=pl.BlockSpec((tm_eff, dim_p), lambda i, h: (i, 0)),
            scratch_shapes=[pltpu.VMEM((tm_eff, dim_p), jnp.float32)],
        ),
        compiler_params=pltpu.CompilerParams(
            dimension_semantics=("parallel", "arbitrary"),
            vmem_limit_bytes=budget,
        ),
        cost_estimate=cost,
    )(x2d, w13, w2)

    return out2d[:M, :dim].reshape(B, S, dim)


def feed_forward(x, packed: PackedFFNWeights, *, tm=None, use_bf16_mxu=False):
    """SwiGLU FFN forward: dropout(w2(silu(w1(x)) * w3(x))) with dropout = identity."""
    if tm is None:
        tm = _default_tm()
    return _feed_forward_packed(x, packed.w13, packed.w2, th=packed.th,
                                tm=int(tm), use_bf16_mxu=bool(use_bf16_mxu))


# ------------------------------------------------------------------------------ tests
def _reference(x, w1, w3, w2):
    h1 = x @ w1
    h3 = x @ w3
    return ((h1 * jax.nn.sigmoid(h1)) * h3) @ w2


def _make_params(key, dim, hidden, dtype):
    k1, k2, k3 = jax.random.split(key, 3)
    w1 = (jax.random.normal(k1, (dim, hidden), jnp.float32) * dim ** -0.5).astype(dtype)
    w3 = (jax.random.normal(k3, (dim, hidden), jnp.float32) * dim ** -0.5).astype(dtype)
    w2 = (jax.random.normal(k2, (hidden, dim), jnp.float32) * hidden ** -0.5).astype(dtype)
    return w1, w3, w2


if __name__ == "__main__":
    key = jax.random.PRNGKey(0)

    # --- Test 1: toy config matching LMConfig hidden_dim derivation (dim=32) ---
    dim, multiple_of = 32, 16
    hidden = multiple_of * ((int(2 * 4 * dim / 3) + multiple_of - 1) // multiple_of)   # 96
    B, S = 2, 8
    kx, kw = jax.random.split(key)
    x = jax.random.normal(kx, (B, S, dim), jnp.float32)
    w1, w3, w2 = _make_params(kw, dim, hidden, jnp.float32)
    packed = pack_ffn_weights(w1, w3, w2)          # one-time packing
    out = jax.block_until_ready(feed_forward(x, packed))
    ref = _reference(x, w1, w3, w2)
    assert out.shape == (B, S, dim)
    assert jnp.allclose(out, ref, atol=1e-3, rtol=1e-3), "test1 mismatch"

    # --- Test 2: multi-chunk hidden axis + ragged M (padding, accumulator, 2 row tiles) ---
    dim2, multiple_of2 = 128, 32
    hidden2 = multiple_of2 * ((int(2 * 4 * dim2 / 3) + multiple_of2 - 1) // multiple_of2)  # 352
    B2, S2 = 3, 37                                  # M = 111 (not tile-aligned)
    kx2, kw2 = jax.random.split(jax.random.fold_in(key, 1))
    x2 = jax.random.normal(kx2, (B2, S2, dim2), jnp.float32)
    w1b, w3b, w2b = _make_params(kw2, dim2, hidden2, jnp.float32)
    packed2 = pack_ffn_weights(w1b, w3b, w2b, th=128)   # n_h = 3 hidden chunks
    out2 = jax.block_until_ready(feed_forward(x2, packed2, tm=64))
    ref2 = _reference(x2, w1b, w3b, w2b)
    assert out2.shape == (B2, S2, dim2)
    assert jnp.allclose(out2, ref2, atol=1e-3, rtol=1e-3), "test2 mismatch"

    # Re-use the same packed weights on a different batch (no per-call weight re-packing).
    x2b = jax.random.normal(jax.random.fold_in(key, 7), (2, 16, dim2), jnp.float32)
    out2b = jax.block_until_ready(feed_forward(x2b, packed2, tm=64))
    assert jnp.allclose(out2b, _reference(x2b, w1b, w3b, w2b), atol=1e-3, rtol=1e-3), "reuse mismatch"

    # --- Test 3: bf16 storage path (f32 accumulation inside the kernel) ---
    x3 = x2[:2, :16].astype(jnp.bfloat16)
    packed3 = pack_ffn_weights(w1b, w3b, w2b, th=128, dtype=jnp.bfloat16)
    out3 = jax.block_until_ready(feed_forward(x3, packed3, use_bf16_mxu=True))
    ref3 = _reference(x3.astype(jnp.float32), w1b, w3b, w2b)
    assert out3.shape == x3.shape
    assert bool(jnp.all(jnp.isfinite(out3.astype(jnp.float32))))
    assert float(jnp.max(jnp.abs(out3.astype(jnp.float32) - ref3))) < 0.25, "bf16 drift"

    print("KERNEL_OK")
</pallas_src>

<mosaic_0001>
module attributes {stable_mosaic.version = 11 : i64} {
  func.func @_ffn_kernel(%arg0: i32, %arg1: i32, %arg2: memref<8x128xf32, #tpu.memory_space<vmem>>, %arg3: memref<128x256xf32, #tpu.memory_space<vmem>>, %arg4: memref<128x128xf32, #tpu.memory_space<vmem>>, %arg5: memref<8x128xf32, #tpu.memory_space<vmem>>, %arg6: memref<8x128xf32, #tpu.memory_space<vmem>>) attributes {dimension_semantics = [#tpu.dimension_semantics<parallel>, #tpu.dimension_semantics<arbitrary>], iteration_bounds = array<i64: 2, 1>, scalar_prefetch = 0 : i64, scratch_operands = 1 : i64, tpu.core_type = #tpu.core_type<tc>, window_params = [{transform_indices = @transform_0, window_bounds = array<i64: 8, 128>}, {transform_indices = @transform_1, window_bounds = array<i64: 128, 256>}, {transform_indices = @transform_2, window_bounds = array<i64: 128, 128>}, {transform_indices = @transform_3, window_bounds = array<i64: 8, 128>}]} {
    %c0 = arith.constant 0 : index
    %c0_0 = arith.constant 0 : index
    %0 = vector.load %arg2[%c0, %c0_0] : memref<8x128xf32, #tpu.memory_space<vmem>>, vector<8x128xf32>
    %c0_1 = arith.constant 0 : index
    %c0_2 = arith.constant 0 : index
    %1 = vector.load %arg3[%c0_1, %c0_2] : memref<128x256xf32, #tpu.memory_space<vmem>>, vector<128x256xf32>
    %cst = arith.constant dense<0.000000e+00> : vector<8x256xf32>
    %2 = tpu.matmul %0, %1, %cst {dimension_numbers = #tpu.dot_dimension_numbers<[1], [0], [0], [1], [0, 0, 1, 1], [], []>} : vector<8x128xf32>, vector<128x256xf32>, vector<8x256xf32> -> vector<8x256xf32>
    %3 = vector.extract_strided_slice %2 {offsets = [0, 0], sizes = [8, 128], strides = [1, 1]} : vector<8x256xf32> to vector<8x128xf32>
    %4 = vector.extract_strided_slice %2 {offsets = [0, 128], sizes = [8, 128], strides = [1, 1]} : vector<8x256xf32> to vector<8x128xf32>
    %5 = arith.negf %3 : vector<8x128xf32>
    %6 = math.exp %5 : vector<8x128xf32>
    %cst_3 = arith.constant 1.000000e+00 : f32
    %7 = vector.broadcast %cst_3 : f32 to vector<8x128xf32>
    %8 = arith.addf %7, %6 : vector<8x128xf32>
    %9 = arith.divf %7, %8 : vector<8x128xf32>
    %10 = arith.mulf %3, %9 : vector<8x128xf32>
    %11 = arith.mulf %10, %4 : vector<8x128xf32>
    %c0_4 = arith.constant 0 : index
    %c0_5 = arith.constant 0 : index
    %12 = vector.load %arg4[%c0_4, %c0_5] : memref<128x128xf32, #tpu.memory_space<vmem>>, vector<128x128xf32>
    %cst_6 = arith.constant dense<0.000000e+00> : vector<8x128xf32>
    %13 = tpu.matmul %11, %12, %cst_6 {dimension_numbers = #tpu.dot_dimension_numbers<[1], [0], [0], [1], [0, 0, 1, 1], [], []>} : vector<8x128xf32>, vector<128x128xf32>, vector<8x128xf32> -> vector<8x128xf32>
    %c0_i32 = arith.constant 0 : i32
    %14 = arith.cmpi eq, %arg1, %c0_i32 : i32
    %15 = arith.extui %14 : i1 to i32
    %c0_i32_7 = arith.constant 0 : i32
    %16 = arith.cmpi ne, %15, %c0_i32_7 : i32
    scf.if %16 {
      %c0_12 = arith.constant 0 : index
      %c0_13 = arith.constant 0 : index
      %23 = vector.load %arg6[%c0_12, %c0_13] : memref<8x128xf32, #tpu.memory_space<vmem>>, vector<8x128xf32>
      tpu.vector_store %arg6[%c0_12, %c0_13], %13 {strides = array<i32>} : memref<8x128xf32, #tpu.memory_space<vmem>>, vector<8x128xf32>,
    } else {
    }
    %c0_i32_8 = arith.constant 0 : i32
    %17 = arith.cmpi sgt, %arg1, %c0_i32_8 : i32
    %18 = arith.extui %17 : i1 to i32
    %c0_i32_9 = arith.constant 0 : i32
    %19 = arith.cmpi ne, %18, %c0_i32_9 : i32
    scf.if %19 {
      %c0_12 = arith.constant 0 : index
      %c0_13 = arith.constant 0 : index
      %23 = vector.load %arg6[%c0_12, %c0_13] : memref<8x128xf32, #tpu.memory_space<vmem>>, vector<8x128xf32>
      %24 = arith.addf %23, %13 : vector<8x128xf32>
      %c0_14 = arith.constant 0 : index
      %c0_15 = arith.constant 0 : index
      %25 = vector.load %arg6[%c0_14, %c0_15] : memref<8x128xf32, #tpu.memory_space<vmem>>, vector<8x128xf32>
      tpu.vector_store %arg6[%c0_14, %c0_15], %24 {strides = array<i32>} : memref<8x128xf32, #tpu.memory_space<vmem>>, vector<8x128xf32>,
    } else {
    }
    %c0_i32_10 = arith.constant 0 : i32
    %20 = arith.cmpi eq, %arg1, %c0_i32_10 : i32
    %21 = arith.extui %20 : i1 to i32
    %c0_i32_11 = arith.constant 0 : i32
    %22 = arith.cmpi ne, %21, %c0_i32_11 : i32
    scf.if %22 {
      %c0_12 = arith.constant 0 : index
      %c0_13 = arith.constant 0 : index
      %23 = vector.load %arg6[%c0_12, %c0_13] : memref<8x128xf32, #tpu.memory_space<vmem>>, vector<8x128xf32>
      %c0_14 = arith.constant 0 : index
      %c0_15 = arith.constant 0 : index
      %24 = vector.load %arg5[%c0_14, %c0_15] : memref<8x128xf32, #tpu.memory_space<vmem>>, vector<8x128xf32>
      tpu.vector_store %arg5[%c0_14, %c0_15], %23 {strides = array<i32>} : memref<8x128xf32, #tpu.memory_space<vmem>>, vector<8x128xf32>,
    } else {
    }
    return
  }
  func.func @transform_0(%arg0: i32, %arg1: i32) -> (i32, i32) {
    %c0_i32 = arith.constant 0 : i32
    %c0_i32_0 = arith.constant 0 : i32
    return %arg0, %c0_i32 : i32, i32
  }
  func.func @transform_1(%arg0: i32, %arg1: i32) -> (i32, i32) {
    %c0_i32 = arith.constant 0 : i32
    %c0_i32_0 = arith.constant 0 : i32
    return %c0_i32, %arg1 : i32, i32
  }
  func.func @transform_2(%arg0: i32, %arg1: i32) -> (i32, i32) {
    %c0_i32 = arith.constant 0 : i32
    %c0_i32_0 = arith.constant 0 : i32
    return %arg1, %c0_i32 : i32, i32
  }
  func.func @transform_3(%arg0: i32, %arg1: i32) -> (i32, i32) {
    %c0_i32 = arith.constant 0 : i32
    %c0_i32_0 = arith.constant 0 : i32
    return %arg0, %c0_i32 : i32, i32
  }
}

</mosaic_0001>

<bundles_post_ra>
// kernel: _feed_forward_packed.1
= control target key start
LH: loop header
LB: loop body
LE: loop exit
PB: predicated region body
PF: predicated region fallthrough
CT: control target
= control target key end

     0   :  { %8 = vsyncpa [#allocation4], 0  ;;  %s1267_s0 = inlined_call_operand.hbm [shape: f32[16,128], index: 0, kind: input, shape index: {}]   ;;  %s1268_s1 = inlined_call_operand.hbm [shape: f32[128,256], index: 1, kind: input, shape index: {}]   ;;  %s1269_s2 = inlined_call_operand.hbm [shape: f32[128,128], index: 2, kind: input, shape index: {}]   ;;  %s1270_s3 = inlined_call_operand.hbm [shape: f32[16,128], index: 3, kind: output, shape index: {}]  }
   0x1   :  { %10 = vsyncpa [#allocation4 + $0x1], 0 }
   0x2   :  { %11 = vsyncpa [#allocation7], 0 }
   0x3   :  { %12 = vsyncpa [#allocation5], 0 }
   0x4   :  { %14 = vsyncpa [#allocation5 + $0x1], 0  ;;  %s1000_s12 = smov 0   ;;  %s1002_s13 = smov 0  }
   0x5   :  { %s1004_s14 = smov 0   ;;  %s1006_s15 = smov 0  }
   0x6   :  { %s1008_s16 = smov 0   ;;  %s1010_s17 = smov 0  }
   0x7 LB: > { %s575_s18 = sadd.s32 4294967295, %s967_s17   ;;  %s576_s19 = sadd.s32 4294967294, %s967_s17   ;;  %s967_s17 = sphi %s1010_s17, %s20_s17   ;;  %s963_s16 = sphi %s1008_s16, %s1292_s16   ;;  %s959_s15 = sphi %s1006_s15, %s1291_s15   ;;  %s955_s14 = sphi %s1004_s14, %s1290_s14   ;;  %s951_s13 = sphi %s1002_s13, %s1289_s13   ;;  %s947_s12 = sphi %s1000_s12, %s1288_s12  }
   0x8   : > { %p52_p0 = scmp.ne.s32.totalorder %s951_s13, %s947_s12  ;;  %p1034_p1 = scmp.eq.s32.totalorder %s575_s18, 0 }
   0x9   : > { %p1038_p2 = scmp.eq.s32.totalorder %s575_s18, 1  ;;  %p134_p3 = scmp.eq.s32.totalorder %s576_s19, 1 }
   0xa   : > { %s1275_s20 = scalar_select %p1034_p1, 1, 0 }
   0xb   : > { %p1044_p4 = por %p1034_p1, %p52_p0  ;;  %p577_p5 = scmp.ge.s32.totalorder %s967_s17, 1 }
   0xc   : > { %p1049_p6 = por %p134_p3, %p52_p0  ;;  %p141_p7 = scmp.lt.s32.totalorder %s967_s17, 3 }
   0xd   : > { %s1277_s22 = scalar_select %p1044_p4, 1, 0 }
   0xe   : > { %s1278_s23 = scalar_select %p1049_p6, 1, 0 }
   0xf   : > { %p1054_p8 = pnand %p577_p5, %p141_p7  ;;  %s969_s25 = smov [#allocation6]  }
  0x10   : > { %s156_s26 = sshll.u32 %s969_s25, 4  ;;  %s970_s28 = smov [#allocation8]   ;;  %s1058_s26 = int_to_ptr.vmem [resolvable:$true] %s156_s26 }
  0x11   : > { %p713_p9 = pneg %p1054_p8  ;;  %s172_s29 = sshll.u32 %s970_s28, 4  ;;  %s1069_s29 = int_to_ptr.vmem [resolvable:$true] %s172_s29 }
  0x12   : > { %s795_s5 = scalar_lea.hbm %s1268_s1, 4096 }
  0x13   : > { %p1065_p11 = pnand %p713_p9, %p1034_p1  ;;  %p796_p12 = scmp.ne.s32.totalorder %s1268_s1, %s795_s5 }
  0x14   : > { %p802_p5 = scmp.lt.u32.totalorder %s795_s5, %s1268_s1 }
  0x15   : > { %p797_p13 = pneg %p1065_p11 }
  0x17   : > { %p798_p0 = pnand %p797_p13, %p796_p12 }
  0x19   : > { %p799_p3 = pneg %p798_p0 }
  0x1b   : > { %p804_p7 = pnand %p802_p5, %p799_p3 }
  0x1d   : > { %807 = shalt.err (!%p804_p7)
}
  0x1e   : > { %s808_s10 = scalar_lea.vmem %s1058_s26, 4096  ;;  %p816_p1 = scmp.lt.s32.totalorder %s1058_s26, %s1058_s26 }
  0x1f   : > { %p809_p9 = scmp.ne.s32.totalorder %s1058_s26, %s808_s10  ;;  %p817_p12 = scmp.lt.s32.totalorder %s808_s10, %s808_s10 }
  0x21   : > { %p811_p10 = pnand %p809_p9, %p797_p13  ;;  %p818_p0 = por %p817_p12, %p816_p1 }
  0x23   : > { %p812_p6 = pneg %p811_p10 }
  0x25   : > { %p819_p4 = pnand %p818_p0, %p812_p6 }
  0x27   : > { %822 = shalt.err (!%p819_p4)
}
  0x28   : > { %s971_s11 = smov 256   ;;  %s972_s18 = smov 16  }
  0x29   : > { %716 = dma.hbm_to_vmem [thread:$0]  (!%p1065_p11), %s1268_s1, 4096, %s1058_s26, [#allocation7], %s971_s11, %s971_s11, %s972_s18  }
  0x2a   : > { %s823_s4 = scalar_lea.hbm %s1269_s2, 2048 }
  0x2b   : > { %p824_p1 = scmp.ne.s32.totalorder %s1269_s2, %s823_s4  ;;  %p830_p10 = scmp.lt.u32.totalorder %s823_s4, %s1269_s2 }
  0x2d   : > { %p826_p4 = pnand %p824_p1, %p797_p13 }
  0x2f   : > { %p827_p6 = pneg %p826_p4 }
  0x31   : > { %p832_p3 = pnand %p830_p10, %p827_p6 }
  0x33   : > { %835 = shalt.err (!%p832_p3)
}
  0x34   : > { %s836_s26 = scalar_lea.vmem %s1069_s29, 2048  ;;  %p844_p12 = scmp.lt.s32.totalorder %s1069_s29, %s1069_s29 }
  0x35   : > { %p837_p5 = scmp.ne.s32.totalorder %s1069_s29, %s836_s26  ;;  %p845_p0 = scmp.lt.s32.totalorder %s836_s26, %s836_s26 }
  0x37   : > { %p839_p7 = pnand %p837_p5, %p797_p13  ;;  %p846_p1 = por %p845_p0, %p844_p12 }
  0x39   : > { %p840_p9 = pneg %p839_p7 }
  0x3b   : > { %p847_p4 = pnand %p846_p1, %p840_p9 }
  0x3d   : > { %850 = shalt.err (!%p847_p4)
}
  0x3e   : > { %s973_s9 = smov 128   ;;  %s974_s10 = smov 8  }
  0x3f   : > { %719 = dma.hbm_to_vmem [thread:$0]  (!%p1065_p11), %s1269_s2, 2048, %s1069_s29, [#allocation7], %s973_s9, %s973_s9, %s974_s10  }
  0x40   : > { %s32_s19 = sadd.s32 1, %s963_s16  ;;  %s39_s25 = sadd.s32 1, %s955_s14 }
  0x41   : > { %p34_p13 = scmp.ge.s32.totalorder %s32_s19, 2  ;;  %p46_p6 = scmp.ne.s32.totalorder %s955_s14, %s951_s13 }
  0x42   : > { %p47_p10 = scmp.eq.s32.totalorder %s967_s17, 0  ;;  %p730_p3 = scmp.lt.s32.totalorder %s967_s17, 2 }
  0x43   : > { %s1294_s19 = smov (%p34_p13, %s32_s19), 0  ;;  %p1133_p7 = por %p1038_p2, %p46_p6 }
  0x44   : > { %p48_p5 = por %p47_p10, %p46_p6  ;;  %s36_s27 = ssub.s32 %s963_s16, %s1294_s19 }
  0x45   : > { %s1281_s28 = scalar_select %p1133_p7, 1, 0 }
  0x46   : > { %s186_s30 = sand.u32 1, %s955_s14   ;;  %p37_p9 = scmp.eq.s32.totalorder %s36_s27, 0 }
  0x47   : > { %s581_s29 = sshll.u32 %s186_s30, 3  ;;  %s582_s4 = sshll.u32 %s963_s16, 7 }
  0x48   : > { %s1142_s5 = scalar_select %p37_p9, %s955_s14, %s39_s25  }
  0x49   : > { %s1147_s8 = scalar_lea.hbm %s1267_s0, %s582_s4  ;;  %s190_s21 = scalar_lea.vmem [#allocation3], %s581_s29 }
  0x4a   : > { %s197_s26 = sshll.u32 %s190_s21, 4  ;;  %p1151_p2 = pnand %p730_p3, %p48_p5  ;;  %s1155_s26 = int_to_ptr.vmem [resolvable:$true] %s197_s26 }
  0x4b   : > { %s187_s10 = scalar_lea.sflag [#allocation4], %s186_s30  ;;  %s851_s11 = scalar_lea.hbm %s1147_s8, 128 }
  0x4c   : > { %p852_p11 = scmp.ne.s32.totalorder %s1147_s8, %s851_s11  ;;  %p853_p12 = pneg %p1151_p2 }
  0x4d   : > { %s856_s27 = scalar_lea.hbm %s1267_s0, 256  ;;  %p857_p4 = scmp.lt.u32.totalorder %s1147_s8, %s1267_s0 }
  0x4e   : > { %p854_p0 = pnand %p853_p12, %p852_p11  ;;  %p858_p13 = scmp.lt.u32.totalorder %s856_s27, %s851_s11 }
  0x4f   : > { %p860_p10 = scmp.lt.u32.totalorder %s851_s11, %s1147_s8 }
  0x50   : > { %p855_p1 = pneg %p854_p0  ;;  %p859_p6 = por %p858_p13, %p857_p4 }
  0x52   : > { %p861_p3 = por %p860_p10, %p859_p6 }
  0x54   : > { %p862_p5 = pnand %p861_p3, %p855_p1 }
  0x56   : > { %865 = shalt.err (!%p862_p5)
}
  0x57   : > { %s866_s30 = scalar_lea.vmem %s1155_s26, 128  ;;  %s975_s6 = smov [#allocation3]  }
  0x58   : > { %p867_p9 = scmp.ne.s32.totalorder %s1155_s26, %s866_s30  ;;  %s871_s7 = sshll.u32 %s975_s6, 4  ;;  %s872_s7 = int_to_ptr.vmem [resolvable:$false] %s871_s7 }
  0x59   : > { %s873_s21 = scalar_lea.vmem %s872_s7, 256  ;;  %p874_p7 = scmp.lt.s32.totalorder %s1155_s26, %s872_s7 }
  0x5a   : > { %p869_p11 = pnand %p867_p9, %p853_p12  ;;  %p875_p4 = scmp.lt.s32.totalorder %s873_s21, %s866_s30 }
  0x5c   : > { %p870_p0 = pneg %p869_p11  ;;  %p876_p13 = por %p875_p4, %p874_p7 }
  0x5e   : > { %p877_p6 = pnand %p876_p13, %p870_p0 }
  0x60   : > { %880 = shalt.err (!%p877_p6)
}
  0x61   : > { %723 = dma.hbm_to_vmem [thread:$0]  (!%p1151_p2), %s1147_s8, 128, %s1155_s26, %s187_s10  }
  0x62   : > { %206 = sbr.rel (%p1054_p8) target bundleno = 612 (0x264), region = 32  ;;  %s1185_s11 = sand.u32 (!%p1054_p8), 1, %s951_s13  }
  0x63   : > { %s584_s18 = sshll.u32 (!%p1054_p8), %s1185_s11, 3  ;;  %s209_s25 = scalar_lea.sflag (!%p1054_p8), [#allocation4], %s1185_s11 }
  0x64   : > { %s1191_s27 = scalar_lea.vmem (!%p1054_p8), [#allocation3], %s584_s18  ;;  %p1283_p7 = scmp.ne.s32.totalorder (!%p1054_p8), %s1277_s22, 0 }
  0x69   : > { %934 = dma.done.wait (%p1283_p7), %s209_s25, 128  }
  0x6a   : > { %936 = vsyncadd (%p1283_p7), %s209_s25, 4294967168  ;;  %p1284_p2 = scmp.ne.s32.totalorder %s1275_s20, 0 }
  0x6c   : > { %938 = dma.done.wait (%p1284_p2), [#allocation7], 6144  }
  0x6d   : > { %940 = vsyncadd (%p1284_p2), [#allocation7], 4294961152  ;;  %v976_v0 = vmov 0.0   ;;  %v977_v1 = vmov 0.0|0.0   ;;  %v247_v2 = vld [vmem:[#allocation6 + $0x8] sm:$0xff]  ;;  %v249_v3 = vld [vmem:[#allocation6 + $0x18] sm:$0xff] }
  0x6e   : > { %342 = vmatprep.mubr.f32.mxu0 %v976_v0  ;;  %677 = vmatprep.subr.bf16.mxu1 %v977_v1  ;;  %v246_v4 = vld [vmem:[#allocation6] sm:$0xff]  ;;  %v645_v5 = vpack.c.bf16 %v249_v3, %v247_v2  ;;  %v248_v6 = vld [vmem:[#allocation6 + $0x10] sm:$0xff]  ;;  %v251_v7 = vld [vmem:[#allocation6 + $0x28] sm:$0xff]  ;;  %vm978_vm0 = vmmov 0   ;;  %s242_s20 = scalar_lea.vmem [#allocation9], %s584_s18  ;;  %s590_s24 = sshll.u32 %s959_s15, 7 }
  0x6f   : > { %v253_v8 = vld [vmem:[#allocation6 + $0x38] sm:$0xff]  ;;  %v647_v9 = vpack.c.bf16 %v248_v6, %v246_v4  ;;  %v250_v11 = vld [vmem:[#allocation6 + $0x20] sm:$0xff]  ;;  %v252_v12 = vld [vmem:[#allocation6 + $0x30] sm:$0xff]  ;;  %642 = vmatprep.mubr.msk.f32.mxu1 %vm978_vm0, %v976_v0  ;;  %s474_s22 = sshll.u32 %s242_s20, 4  ;;  %s1220_s9 = scalar_lea.hbm %s1270_s3, %s590_s24  ;;  %s1215_s22 = int_to_ptr.vmem [resolvable:$true] %s474_s22 }
  0x70   : > { %v649_v10 = vpack.c.bf16 %v253_v8, %v251_v7  ;;  %v255_v13 = vld [vmem:[#allocation6 + $0x48] sm:$0xff]  ;;  %646 = vmatprep.subr.bf16.mxu0 %v645_v5  ;;  %v257_v14 = vld [vmem:[#allocation6 + $0x58] sm:$0xff]  ;;  %v651_v15 = vpack.c.bf16 %v252_v12, %v250_v11  ;;  %v254_v17 = vld [vmem:[#allocation6 + $0x40] sm:$0xff]  ;;  %s461_s10 = scalar_lea.sflag [#allocation5], %s1185_s11  ;;  %s881_s29 = scalar_lea.vmem %s1215_s22, 128 }
  0x71   : > { %648 = vmatpush1.bf16.msra.mxu0 %v647_v9  ;;  %v653_v16 = vpack.c.bf16 %v257_v14, %v255_v13  ;;  %v256_v18 = vld [vmem:[#allocation6 + $0x50] sm:$0xff]  ;;  %v259_v19 = vld [vmem:[#allocation6 + $0x68] sm:$0xff]  ;;  %v261_v20 = vld [vmem:[#allocation6 + $0x78] sm:$0xff]  ;;  %p882_p8 = scmp.ne.s32.totalorder %s1215_s22, %s881_s29  ;;  %p1285_p12 = scmp.ne.s32.totalorder %s1281_s28, 0 }
  0x72   : > { %650 = vmatprep.subr.bf16.mxu0 %v649_v10  ;;  %v655_v21 = vpack.c.bf16 %v256_v18, %v254_v17  ;;  %v657_v22 = vpack.c.bf16 %v261_v20, %v259_v19  ;;  %v258_v23 = vld [vmem:[#allocation6 + $0x60] sm:$0xff]  ;;  %v260_v24 = vld [vmem:[#allocation6 + $0x70] sm:$0xff]  ;;  %v263_v25 = vld [vmem:[#allocation6 + $0x88] sm:$0xff]  ;;  %s979_s15 = smov [#allocation9]  }
  0x73   : > { %v265_v26 = vld [vmem:[#allocation6 + $0x98] sm:$0xff]  ;;  %v659_v27 = vpack.c.bf16 %v260_v24, %v258_v23  ;;  %v262_v29 = vld [vmem:[#allocation6 + $0x80] sm:$0xff]  ;;  %v264_v30 = vld [vmem:[#allocation6 + $0x90] sm:$0xff]  ;;  %p883_p1 = pnand %p882_p8, %p1285_p12  ;;  %s885_s4 = sshll.u32 %s979_s15, 4  ;;  %s886_s4 = int_to_ptr.vmem [resolvable:$false] %s885_s4 }
  0x74   : > { %v661_v28 = vpack.c.bf16 %v265_v26, %v263_v25  ;;  %v267_v31 = vld [vmem:[#allocation6 + $0xa8] sm:$0xff]  ;;  %v269_v32 = vld [vmem:[#allocation6 + $0xb8] sm:$0xff]  ;;  %v663_v33 = vpack.c.bf16 %v264_v30, %v262_v29  ;;  %v266_v35 = vld [vmem:[#allocation6 + $0xa0] sm:$0xff]  ;;  %s887_s30 = scalar_lea.vmem %s886_s4, 256  ;;  %p888_p3 = scmp.lt.s32.totalorder %s1215_s22, %s886_s4 }
  0x75   : > { %652 = vmatpush1.bf16.msra.mxu0 %v651_v15  ;;  %v665_v34 = vpack.c.bf16 %v269_v32, %v267_v31  ;;  %v268_v36 = vld [vmem:[#allocation6 + $0xb0] sm:$0xff]  ;;  %v271_v37 = vld [vmem:[#allocation6 + $0xc8] sm:$0xff]  ;;  %v273_v38 = vld [vmem:[#allocation6 + $0xd8] sm:$0xff]  ;;  %p884_p10 = pneg %p883_p1  ;;  %p889_p5 = scmp.lt.s32.totalorder %s887_s30, %s881_s29 }
  0x76   : > { %654 = vmatprep.subr.bf16.mxu0 %v653_v16  ;;  %v667_v39 = vpack.c.bf16 %v268_v36, %v266_v35  ;;  %v669_v40 = vpack.c.bf16 %v273_v38, %v271_v37  ;;  %v270_v41 = vld [vmem:[#allocation6 + $0xc0] sm:$0xff]  ;;  %v272_v42 = vld [vmem:[#allocation6 + $0xd0] sm:$0xff]  ;;  %v275_v43 = vld [vmem:[#allocation6 + $0xe8] sm:$0xff] }
  0x77   : > { %v277_v44 = vld [vmem:[#allocation6 + $0xf8] sm:$0xff]  ;;  %v671_v45 = vpack.c.bf16 %v272_v42, %v270_v41  ;;  %v274_v47 = vld [vmem:[#allocation6 + $0xe0] sm:$0xff]  ;;  %v276_v48 = vld [vmem:[#allocation6 + $0xf0] sm:$0xff]  ;;  %p890_p9 = por %p889_p5, %p888_p3 }
  0x78   : > { %v673_v46 = vpack.c.bf16 %v277_v44, %v275_v43  ;;  %v675_v49 = vpack.c.bf16 %v276_v48, %v274_v47  ;;  %v245_v50 = vld [vmem:[%s1191_s27] sm:$0xff]  ;;  %v357_v51 = vld [vmem:[#allocation8] sm:$0xff]  ;;  %v358_v52 = vld [vmem:[#allocation8 + $0x8] sm:$0xff] }
  0x79   : > { %656 = vmatpush1.bf16.msra.mxu0 %v655_v21  ;;  %v678_v53 = vpack.c.bf16 %v358_v52, %v357_v51  ;;  %v359_v54 = vld [vmem:[#allocation8 + $0x10] sm:$0xff]  ;;  %v360_v55 = vld [vmem:[#allocation8 + $0x18] sm:$0xff]  ;;  %v361_v57 = vld [vmem:[#allocation8 + $0x20] sm:$0xff]  ;;  %p891_p11 = pnand %p890_p9, %p884_p10 }
  0x7a   : > { %658 = vmatprep.subr.bf16.mxu0 %v657_v22  ;;  %v681_v56 = vpack.c.bf16 %v360_v55, %v359_v54  ;;  %v362_v58 = vld [vmem:[#allocation8 + $0x28] sm:$0xff]  ;;  %v363_v60 = vld [vmem:[#allocation8 + $0x30] sm:$0xff]  ;;  %v364_v61 = vld [vmem:[#allocation8 + $0x38] sm:$0xff] }
  0x7b   : > { %679 = vmatpush3.bf16.msra.mxu1 %v678_v53  ;;  %v684_v59 = vpack.c.bf16 %v362_v58, %v361_v57  ;;  %v687_v62 = vpack.c.bf16 %v364_v61, %v363_v60  ;;  %v365_v63 = vld [vmem:[#allocation8 + $0x40] sm:$0xff]  ;;  %v366_v2 = vld [vmem:[#allocation8 + $0x48] sm:$0xff]  ;;  %v367_v4 = vld [vmem:[#allocation8 + $0x50] sm:$0xff] }
  0x7c   : > { %680 = vmatprep.subr.bf16.mxu1 %v977_v1  ;;  %v690_v3 = vpack.c.bf16 %v366_v2, %v365_v63  ;;  %v368_v5 = vld [vmem:[#allocation8 + $0x58] sm:$0xff]  ;;  %v369_v7 = vld [vmem:[#allocation8 + $0x60] sm:$0xff]  ;;  %v370_v8 = vld [vmem:[#allocation8 + $0x68] sm:$0xff] }
  0x7d   : > { %660 = vmatpush1.bf16.msra.mxu0 %v659_v27  ;;  %v693_v6 = vpack.c.bf16 %v368_v5, %v367_v4  ;;  %v696_v9 = vpack.c.bf16 %v370_v8, %v369_v7  ;;  %v371_v10 = vld [vmem:[#allocation8 + $0x70] sm:$0xff]  ;;  %v372_v11 = vld [vmem:[#allocation8 + $0x78] sm:$0xff] }
  0x7e   : > { %662 = vmatprep.subr.bf16.mxu0 %v661_v28  ;;  %v699_v12 = vpack.c.bf16 %v372_v11, %v371_v10 }
  0x7f   : > { %682 = vmatpush3.bf16.msra.mxu1 %v681_v56 }
  0x80   : > { %683 = vmatprep.subr.bf16.mxu1 %v977_v1 }
  0x81   : > { %664 = vmatpush1.bf16.msra.mxu0 %v663_v33 }
  0x82   : > { %666 = vmatprep.subr.bf16.mxu0 %v665_v34 }
  0x83   : > { %685 = vmatpush3.bf16.msra.mxu1 %v684_v59 }
  0x84   : > { %686 = vmatprep.subr.bf16.mxu1 %v977_v1 }
  0x85   : > { %668 = vmatpush1.bf16.msra.mxu0 %v667_v39 }
  0x86   : > { %670 = vmatprep.subr.bf16.mxu0 %v669_v40 }
  0x87   : > { %688 = vmatpush3.bf16.msra.mxu1 %v687_v62 }
  0x88   : > { %689 = vmatprep.subr.bf16.mxu1 %v977_v1 }
  0x89   : > { %672 = vmatpush1.bf16.msra.mxu0 %v671_v45 }
  0x8a   : > { %674 = vmatprep.subr.bf16.mxu0 %v673_v46 }
  0x8b   : > { %691 = vmatpush3.bf16.msra.mxu1 %v690_v3 }
  0x8c   : > { %692 = vmatprep.subr.bf16.mxu1 %v977_v1 }
  0x8d   : > { %676 = vmatpush1.bf16.msra.mxu0 %v675_v49 }
  0x8f   : > { %694 = vmatpush3.bf16.msra.mxu1 %v693_v6 }
  0x90   : > { %343 = vmatmul.mubr.f32.vlgmr.msra.gmra.mrb[0].mxu0 %v245_v50  ;;  %695 = vmatprep.subr.bf16.mxu1 %v977_v1 }
  0x93   : > { %697 = vmatpush3.bf16.msra.mxu1 %v696_v9 }
  0x94   : > { %698 = vmatprep.subr.bf16.mxu1 %v977_v1 }
  0x97   : > { %700 = vmatpush3.bf16.msra.mxu1 %v699_v12 }
 0x163   : > { %v344_v13 = vpop.f32.mrb[0].mxu0 }
 0x164   : > { %v588_v14 = vmul.f32 -1.442695, %v344_v13  ;;  %v346_v15 = vpop.f32.mrb[1].mxu0 }
 0x166   : > { %791 = vpow2.f32 %v588_v14 }
 0x170   : > { %v792_v16 = vpop.eup %791 }
 0x171   : > { %v352_v17 = vadd.f32 1.0, %v792_v16 }
 0x173   : > { %793 = vrcp.f32 %v352_v17 }
 0x17d   : > { %v794_v18 = vpop.eup %793 }
 0x17e   : > { %v355_v1 = vmul.f32 %v794_v18, %v344_v13 }
 0x180   : > { %v356_v19 = vmul.f32 %v355_v1, %v346_v15 }
 0x182   : > { %643 = vmatmul.mubr.f32.vlgmr.msra.gmra.mrb[0].mxu1 %v356_v19 }
 0x255   : > { %v439_v0 = vpop.f32.mrb[0].mxu1 }
 0x256   : > { %459 = vst [vmem:[%s242_s20] sm:$0xff] %v439_v0  ;;  %v644_v20 = vpop.f32.mrb[1].mxu1 }
 0x257   : > { %894 = shalt.err (!%p891_p11)
}
 0x258   : > { %s895_s6 = scalar_lea.hbm %s1220_s9, 128  ;;  %s899_s11 = scalar_lea.hbm %s1270_s3, 256 }
 0x259   : > { %p896_p0 = scmp.ne.s32.totalorder %s1220_s9, %s895_s6  ;;  %p900_p6 = scmp.lt.u32.totalorder %s1220_s9, %s1270_s3 }
 0x25a   : > { %p901_p7 = scmp.lt.u32.totalorder %s899_s11, %s895_s6  ;;  %p903_p8 = scmp.lt.u32.totalorder %s895_s6, %s1220_s9 }
 0x25b   : > { %p897_p4 = pnand %p896_p0, %p1285_p12 }
 0x25c   : > { %p902_p2 = por %p901_p7, %p900_p6 }
 0x25d   : > { %p898_p13 = pneg %p897_p4 }
 0x25e   : > { %p904_p1 = por %p903_p8, %p902_p2 }
 0x260   : > { %p905_p10 = pnand %p904_p1, %p898_p13 }
 0x262   : > { %908 = shalt.err (!%p905_p10)
}
 0x263   : > { %711 = dma.vmem_to_hbm [thread:$0]  (%p1285_p12), %s1215_s22, 128, %s1220_s9, %s461_s10  }
 0x264 PF: > { %s486_s27 = sand.u32 1, %s947_s12   ;;  %p1286_p3 = scmp.ne.s32.totalorder %s1278_s23, 0 }
 0x265   : > { %p1287_p5 = scmp.ge.s32.totalorder %s967_s17, 2  ;;  %s487_s20 = scalar_lea.sflag [#allocation5], %s486_s27 }
 0x267   : > { %p725_p9 = pnand %p1287_p5, %p1286_p3 }
 0x269   : > { %942 = dma.done.wait (!%p725_p9), %s487_s20, 128  }
 0x26a   : > { %944 = vsyncadd (!%p725_p9), %s487_s20, 4294967168  ;;  %s20_s17 = sadd.s32 1, %s967_s17   ;;  %s1288_s12 = smov %s951_s13 }
 0x26b   : > { %p17_p11 = scmp.ge.s32.totalorder %s20_s17, 4   ;;  %s1289_s13 = smov %s955_s14 }
 0x26c   : > { %s1290_s14 = smov %s1142_s5  ;;  %s1291_s15 = smov %s963_s16 }
 0x26d   : > { %s1292_s16 = smov %s1294_s19  ;;  %19 = sbr.rel (!%p17_p11) target bundleno = 7 (0x7), region = 99 }
 0x274   :  { %492 = vsyncpa [#allocation4], 1 }
 0x275   :  { %494 = vsyncpa [#allocation4 + $0x1], 1 }
 0x276   :  { %495 = vsyncpa [#allocation7], 1 }
 0x277   :  { %496 = vsyncpa [#allocation5], 1 }
 0x278   :  { %498 = vsyncpa [#allocation5 + $0x1], 1 }

</bundles_post_ra>
